<compile_context>
chip_gen: v7x
topology: tpu7x:2x2x1
jax: 0.10.0
libtpu: 0.0.40
codegen_flags: <defaults>
</compile_context>

<pallas_src>
import functools

import jax
import jax.numpy as jnp
from jax.experimental import pallas as pl
from jax.experimental.pallas import tpu as pltpu

LANE = 128
_BN_EPS = 1e-5
_GUMBEL_EPS = 1e-20
_NEG_BIG = -1e30


def _round_up(x, m):
    return (x + m - 1) // m * m


def _gumbel_mlp_kernel(hard, inv_temp, offs, dims,
                       z_ref, f_ref, u_ref, w_ref, r_ref,
                       soft_ref, y_ref):
    """3x Linear + 2x (train-mode BN + ReLU) + softmax + Gumbel-softmax in VMEM.

    w_ref : packed weight slab [rows, 128]   (zero padded, 8-aligned row offsets)
    r_ref : packed row vectors [8, 128]      (g1, be1, g2, be2, b3[+lane mask])
    """
    o1z, o1f, o2, o3 = offs
    z_dim, f_dim = dims

    r = r_ref[...]                       # single load, sliced as a value below
    g1, be1 = r[0:1, :], r[1:2, :]
    g2, be2 = r[2:3, :], r[3:4, :]
    b3 = r[4:5, :]                       # padded class lanes hold -1e30 (mask)

    # ---- Linear 1 (bias cancelled by BN) + BatchNorm (batch stats) + ReLU ----
    h = (jnp.dot(z_ref[...], w_ref[o1z:o1z + z_dim, :],
                 preferred_element_type=jnp.float32)
         + jnp.dot(f_ref[...], w_ref[o1f:o1f + f_dim, :],
                   preferred_element_type=jnp.float32))
    m = jnp.mean(h, axis=0, keepdims=True)
    v = jnp.mean((h - m) ** 2, axis=0, keepdims=True)
    h = (h - m) * jax.lax.rsqrt(v + _BN_EPS) * g1 + be1
    h = jnp.maximum(h, 0.0)              # padded lanes stay exactly 0

    # ---- Linear 2 (bias cancelled by BN) + BatchNorm + ReLU ----
    h = jnp.dot(h, w_ref[o2:o2 + LANE, :], preferred_element_type=jnp.float32)
    m = jnp.mean(h, axis=0, keepdims=True)
    v = jnp.mean((h - m) ** 2, axis=0, keepdims=True)
    h = (h - m) * jax.lax.rsqrt(v + _BN_EPS) * g2 + be2
    h = jnp.maximum(h, 0.0)

    # ---- Linear 3 -> logits; padded class lanes become -1e30 via b3 row ----
    logits = jnp.dot(h, w_ref[o3:o3 + LANE, :],
                     preferred_element_type=jnp.float32) + b3

    # ---- plain softmax over classes; only row 0 is consumed downstream ----
    lmax = jnp.max(logits, axis=1, keepdims=True)
    e = jnp.exp(logits - lmax)
    soft = e * pl.reciprocal(jnp.sum(e, axis=1, keepdims=True), approx=True)
    soft_ref[...] = soft[0:1, :]

    # ---- Gumbel-softmax sample ----
    noise = -jnp.log(-jnp.log(u_ref[...] + _GUMBEL_EPS) + _GUMBEL_EPS)
    yl = (logits + noise) * inv_temp
    ymax = jnp.max(yl, axis=1, keepdims=True)
    ey = jnp.exp(yl - ymax)
    y = ey * pl.reciprocal(jnp.sum(ey, axis=1, keepdims=True), approx=True)

    if hard:
        # Matches torch.eq(y, max(y)) forward semantics (ties give multiple 1s).
        # TODO(synk): the (y_hard - y).detach() + y straight-through gradient is
        # autograd-only; forward one-hot value is reproduced here.
        y = jnp.where(y == jnp.max(y, axis=1, keepdims=True), 1.0, 0.0)

    y_ref[...] = y


def _pack_params(params, z_dim, f_dim, h1, mid, n_class):
    """Pack all parameters into two 128-lane, zero-padded VMEM slabs."""
    o1z = 0
    o1f = _round_up(z_dim, 8)
    o2 = o1f + _round_up(f_dim, 8)
    o3 = o2 + LANE
    total = o3 + LANE

    w = jnp.zeros((total, LANE), jnp.float32)
    w = w.at[o1z:o1z + z_dim, :h1].set(params["w1"][:z_dim])
    w = w.at[o1f:o1f + f_dim, :h1].set(params["w1"][z_dim:])
    w = w.at[o2:o2 + h1, :mid].set(params["w2"])
    w = w.at[o3:o3 + mid, :n_class].set(params["w3"])

    r = jnp.zeros((8, LANE), jnp.float32)
    r = r.at[0, :h1].set(params["g1"][0])
    r = r.at[1, :h1].set(params["be1"][0])
    r = r.at[2, :mid].set(params["g2"][0])
    r = r.at[3, :mid].set(params["be2"][0])
    r = r.at[4, :].set(jnp.full((LANE,), _NEG_BIG, jnp.float32))  # class mask
    r = r.at[4, :n_class].set(params["b3"][0])
    return w, r, (o1z, o1f, o2, o3)


def init_params(num_generator, z_dim, key):
    """Deterministic parameter init matching the module's layer shapes."""
    f_dim = num_generator * z_dim
    in_dim = z_dim + f_dim
    h1 = (z_dim + f_dim) // 2

    def linear(key, fan_in, fan_out):
        kw, kb = jax.random.split(key)
        bound = 1.0 / jnp.sqrt(fan_in)
        w = jax.random.uniform(kw, (fan_in, fan_out), jnp.float32, -bound, bound)
        b = jax.random.uniform(kb, (1, fan_out), jnp.float32, -bound, bound)
        return w, b

    k1, k2, k3 = jax.random.split(key, 3)
    w1, b1 = linear(k1, in_dim, h1)
    w2, b2 = linear(k2, h1, z_dim)
    w3, b3 = linear(k3, z_dim, num_generator)
    # b1/b2 exist as parameters but are exactly cancelled by the training-mode
    # BatchNorm mean subtraction, so the kernel never consumes them.
    return {
        "w1": w1, "b1": b1,
        "g1": jnp.ones((1, h1), jnp.float32), "be1": jnp.zeros((1, h1), jnp.float32),
        "w2": w2, "b2": b2,
        "g2": jnp.ones((1, z_dim), jnp.float32), "be2": jnp.zeros((1, z_dim), jnp.float32),
        "w3": w3, "b3": b3,
    }


@functools.partial(jax.jit, static_argnames=("imsize", "temperature", "hard"))
def gumbel_net_forward(params, z, feature, u_noise, imsize, temperature, hard):
    """Equivalent of Gumbel_Net.forward(z, feature, imsize, temperature, hard)."""
    z = z.astype(jnp.float32)
    feature = feature.astype(jnp.float32)
    B, z_dim = z.shape
    f_dim = feature.shape[1]
    h1 = params["w1"].shape[1]
    mid = params["w2"].shape[1]
    n_class = params["w3"].shape[1]
    assert h1 <= LANE and mid <= LANE and n_class <= LANE

    w_slab, r_slab, offs = _pack_params(params, z_dim, f_dim, h1, mid, n_class)
    u_pad = jnp.full((B, LANE), 0.5, jnp.float32).at[:, :n_class].set(
        u_noise.astype(jnp.float32))

    vmem = pl.BlockSpec(memory_space=pltpu.MemorySpace.VMEM)
    kernel = functools.partial(_gumbel_mlp_kernel, bool(hard),
                               float(1.0 / temperature), offs, (z_dim, f_dim))

    soft_pad, y_pad = pl.pallas_call(
        kernel,
        out_shape=(jax.ShapeDtypeStruct((1, LANE), jnp.float32),
                   jax.ShapeDtypeStruct((B, LANE), jnp.float32)),
        in_specs=[vmem] * 5,
        out_specs=(vmem, vmem),
    )(z, feature, u_pad, w_slab, r_slab)

    out_print = soft_pad[:, :n_class]                       # F.softmax(out)[:1]
    y = y_pad[:, :n_class]
    for_print = y                                           # out.clone()
    out = jnp.tile(y.reshape(B, n_class, 1, 1, 1),
                   (1, 1, 3, int(imsize), int(imsize)))     # repeat(1,1,3,im,im)
    return out, for_print, out_print


if __name__ == "__main__":
    num_generator = 4
    z_dim = 8
    f_dim = num_generator * z_dim          # 32
    batch = 2
    imsize = 4
    temperature = 0.7
    hard = True

    key = jax.random.PRNGKey(0)
    kp, kz, kf, ku = jax.random.split(key, 4)

    params = init_params(num_generator, z_dim, kp)
    z = jax.random.normal(kz, (batch, z_dim), jnp.float32)
    feature = jax.random.normal(kf, (batch, f_dim), jnp.float32)
    # torch.rand equivalent (uniform [0,1)) generated deterministically outside
    # the kernel for reproducibility.
    u_noise = jax.random.uniform(ku, (batch, num_generator), jnp.float32)

    out, for_print, out_print = gumbel_net_forward(
        params, z, feature, u_noise, imsize, temperature, hard)
    jax.block_until_ready((out, for_print, out_print))

    assert out.shape == (batch, num_generator, 3, imsize, imsize)
    assert for_print.shape == (batch, num_generator)
    assert out_print.shape == (1, num_generator)
    # each Gumbel-softmax row must be a valid one-hot / distribution
    assert bool(jnp.all(jnp.abs(jnp.sum(for_print, axis=1) - 1.0) < 1e-2))
    print("KERNEL_OK")
</pallas_src>

<mosaic_0001>
module attributes {stable_mosaic.version = 11 : i64} {
  func.func @_gumbel_mlp_kernel(%arg0: memref<2x8xf32, #tpu.memory_space<vmem>>, %arg1: memref<2x32xf32, #tpu.memory_space<vmem>>, %arg2: memref<2x128xf32, #tpu.memory_space<vmem>>, %arg3: memref<296x128xf32, #tpu.memory_space<vmem>>, %arg4: memref<8x128xf32, #tpu.memory_space<vmem>>, %arg5: memref<1x128xf32, #tpu.memory_space<vmem>>, %arg6: memref<2x128xf32, #tpu.memory_space<vmem>>) attributes {dimension_semantics = [], scalar_prefetch = 0 : i64, scratch_operands = 0 : i64, tpu.core_type = #tpu.core_type<tc>} {
    %c0 = arith.constant 0 : index
    %c0_0 = arith.constant 0 : index
    %0 = vector.load %arg4[%c0, %c0_0] : memref<8x128xf32, #tpu.memory_space<vmem>>, vector<8x128xf32>
    %1 = vector.extract_strided_slice %0 {offsets = [0, 0], sizes = [1, 128], strides = [1, 1]} : vector<8x128xf32> to vector<1x128xf32>
    %2 = vector.extract_strided_slice %0 {offsets = [1, 0], sizes = [1, 128], strides = [1, 1]} : vector<8x128xf32> to vector<1x128xf32>
    %3 = vector.extract_strided_slice %0 {offsets = [2, 0], sizes = [1, 128], strides = [1, 1]} : vector<8x128xf32> to vector<1x128xf32>
    %4 = vector.extract_strided_slice %0 {offsets = [3, 0], sizes = [1, 128], strides = [1, 1]} : vector<8x128xf32> to vector<1x128xf32>
    %5 = vector.extract_strided_slice %0 {offsets = [4, 0], sizes = [1, 128], strides = [1, 1]} : vector<8x128xf32> to vector<1x128xf32>
    %c0_1 = arith.constant 0 : index
    %c0_2 = arith.constant 0 : index
    %6 = vector.load %arg0[%c0_1, %c0_2] : memref<2x8xf32, #tpu.memory_space<vmem>>, vector<2x8xf32>
    %c0_3 = arith.constant 0 : index
    %c0_4 = arith.constant 0 : index
    %7 = vector.load %arg3[%c0_3, %c0_4] : memref<296x128xf32, #tpu.memory_space<vmem>>, vector<8x128xf32>
    %cst = arith.constant dense<0.000000e+00> : vector<2x128xf32>
    %8 = tpu.matmul %6, %7, %cst {dimension_numbers = #tpu.dot_dimension_numbers<[1], [0], [0], [1], [0, 0, 1, 1], [], []>} : vector<2x8xf32>, vector<8x128xf32>, vector<2x128xf32> -> vector<2x128xf32>
    %c0_5 = arith.constant 0 : index
    %c0_6 = arith.constant 0 : index
    %9 = vector.load %arg1[%c0_5, %c0_6] : memref<2x32xf32, #tpu.memory_space<vmem>>, vector<2x32xf32>
    %c8 = arith.constant 8 : index
    %c0_7 = arith.constant 0 : index
    %10 = vector.load %arg3[%c8, %c0_7] : memref<296x128xf32, #tpu.memory_space<vmem>>, vector<32x128xf32>
    %cst_8 = arith.constant dense<0.000000e+00> : vector<2x128xf32>
    %11 = tpu.matmul %9, %10, %cst_8 {dimension_numbers = #tpu.dot_dimension_numbers<[1], [0], [0], [1], [0, 0, 1, 1], [], []>} : vector<2x32xf32>, vector<32x128xf32>, vector<2x128xf32> -> vector<2x128xf32>
    %12 = arith.addf %8, %11 : vector<2x128xf32>
    %cst_9 = arith.constant dense<0.000000e+00> : vector<128xf32>
    %13 = vector.multi_reduction <add>, %12, %cst_9 [0] : vector<2x128xf32> to vector<128xf32>
    %14 = vector.shape_cast %13 : vector<128xf32> to vector<1x128xf32>
    %cst_10 = arith.constant 2.000000e+00 : f32
    %15 = vector.broadcast %cst_10 : f32 to vector<1x128xf32>
    %16 = arith.divf %14, %15 : vector<1x128xf32>
    %17 = vector.broadcast %16 : vector<1x128xf32> to vector<2x128xf32>
    %18 = arith.subf %12, %17 : vector<2x128xf32>
    %19 = arith.mulf %18, %18 : vector<2x128xf32>
    %cst_11 = arith.constant dense<0.000000e+00> : vector<128xf32>
    %20 = vector.multi_reduction <add>, %19, %cst_11 [0] : vector<2x128xf32> to vector<128xf32>
    %21 = vector.shape_cast %20 : vector<128xf32> to vector<1x128xf32>
    %cst_12 = arith.constant 2.000000e+00 : f32
    %22 = vector.broadcast %cst_12 : f32 to vector<1x128xf32>
    %23 = arith.divf %21, %22 : vector<1x128xf32>
    %24 = vector.broadcast %16 : vector<1x128xf32> to vector<2x128xf32>
    %25 = arith.subf %12, %24 : vector<2x128xf32>
    %cst_13 = arith.constant 9.99999974E-6 : f32
    %26 = vector.broadcast %cst_13 : f32 to vector<1x128xf32>
    %27 = arith.addf %23, %26 : vector<1x128xf32>
    %28 = math.rsqrt %27 : vector<1x128xf32>
    %29 = vector.broadcast %28 : vector<1x128xf32> to vector<2x128xf32>
    %30 = arith.mulf %25, %29 : vector<2x128xf32>
    %31 = vector.broadcast %1 : vector<1x128xf32> to vector<2x128xf32>
    %32 = arith.mulf %30, %31 : vector<2x128xf32>
    %33 = vector.broadcast %2 : vector<1x128xf32> to vector<2x128xf32>
    %34 = arith.addf %32, %33 : vector<2x128xf32>
    %cst_14 = arith.constant 0.000000e+00 : f32
    %35 = vector.broadcast %cst_14 : f32 to vector<2x128xf32>
    %36 = arith.maximumf %34, %35 : vector<2x128xf32>
    %c40 = arith.constant 40 : index
    %c0_15 = arith.constant 0 : index
    %37 = vector.load %arg3[%c40, %c0_15] : memref<296x128xf32, #tpu.memory_space<vmem>>, vector<128x128xf32>
    %cst_16 = arith.constant dense<0.000000e+00> : vector<2x128xf32>
    %38 = tpu.matmul %36, %37, %cst_16 {dimension_numbers = #tpu.dot_dimension_numbers<[1], [0], [0], [1], [0, 0, 1, 1], [], []>} : vector<2x128xf32>, vector<128x128xf32>, vector<2x128xf32> -> vector<2x128xf32>
    %cst_17 = arith.constant dense<0.000000e+00> : vector<128xf32>
    %39 = vector.multi_reduction <add>, %38, %cst_17 [0] : vector<2x128xf32> to vector<128xf32>
    %40 = vector.shape_cast %39 : vector<128xf32> to vector<1x128xf32>
    %cst_18 = arith.constant 2.000000e+00 : f32
    %41 = vector.broadcast %cst_18 : f32 to vector<1x128xf32>
    %42 = arith.divf %40, %41 : vector<1x128xf32>
    %43 = vector.broadcast %42 : vector<1x128xf32> to vector<2x128xf32>
    %44 = arith.subf %38, %43 : vector<2x128xf32>
    %45 = arith.mulf %44, %44 : vector<2x128xf32>
    %cst_19 = arith.constant dense<0.000000e+00> : vector<128xf32>
    %46 = vector.multi_reduction <add>, %45, %cst_19 [0] : vector<2x128xf32> to vector<128xf32>
    %47 = vector.shape_cast %46 : vector<128xf32> to vector<1x128xf32>
    %cst_20 = arith.constant 2.000000e+00 : f32
    %48 = vector.broadcast %cst_20 : f32 to vector<1x128xf32>
    %49 = arith.divf %47, %48 : vector<1x128xf32>
    %50 = vector.broadcast %42 : vector<1x128xf32> to vector<2x128xf32>
    %51 = arith.subf %38, %50 : vector<2x128xf32>
    %cst_21 = arith.constant 9.99999974E-6 : f32
    %52 = vector.broadcast %cst_21 : f32 to vector<1x128xf32>
    %53 = arith.addf %49, %52 : vector<1x128xf32>
    %54 = math.rsqrt %53 : vector<1x128xf32>
    %55 = vector.broadcast %54 : vector<1x128xf32> to vector<2x128xf32>
    %56 = arith.mulf %51, %55 : vector<2x128xf32>
    %57 = vector.broadcast %3 : vector<1x128xf32> to vector<2x128xf32>
    %58 = arith.mulf %56, %57 : vector<2x128xf32>
    %59 = vector.broadcast %4 : vector<1x128xf32> to vector<2x128xf32>
    %60 = arith.addf %58, %59 : vector<2x128xf32>
    %cst_22 = arith.constant 0.000000e+00 : f32
    %61 = vector.broadcast %cst_22 : f32 to vector<2x128xf32>
    %62 = arith.maximumf %60, %61 : vector<2x128xf32>
    %c168 = arith.constant 168 : index
    %c0_23 = arith.constant 0 : index
    %63 = vector.load %arg3[%c168, %c0_23] : memref<296x128xf32, #tpu.memory_space<vmem>>, vector<128x128xf32>
    %cst_24 = arith.constant dense<0.000000e+00> : vector<2x128xf32>
    %64 = tpu.matmul %62, %63, %cst_24 {dimension_numbers = #tpu.dot_dimension_numbers<[1], [0], [0], [1], [0, 0, 1, 1], [], []>} : vector<2x128xf32>, vector<128x128xf32>, vector<2x128xf32> -> vector<2x128xf32>
    %65 = vector.broadcast %5 : vector<1x128xf32> to vector<2x128xf32>
    %66 = arith.addf %64, %65 : vector<2x128xf32>
    %cst_25 = arith.constant dense<0xFF800000> : vector<2xf32>
    %67 = vector.multi_reduction <maximumf>, %66, %cst_25 [1] : vector<2x128xf32> to vector<2xf32>
    %68 = vector.shape_cast %67 : vector<2xf32> to vector<2x1xf32>
    %69 = vector.broadcast %68 : vector<2x1xf32> to vector<2x128xf32>
    %70 = arith.subf %66, %69 : vector<2x128xf32>
    %71 = math.exp %70 : vector<2x128xf32>
    %cst_26 = arith.constant dense<0.000000e+00> : vector<2xf32>
    %72 = vector.multi_reduction <add>, %71, %cst_26 [1] : vector<2x128xf32> to vector<2xf32>
    %73 = vector.shape_cast %72 : vector<2xf32> to vector<2x1xf32>
    %74 = tpu.reciprocal %73 {approx = true} : vector<2x1xf32> -> vector<2x1xf32>
    %75 = vector.broadcast %74 : vector<2x1xf32> to vector<2x128xf32>
    %76 = arith.mulf %71, %75 : vector<2x128xf32>
    %77 = vector.extract_strided_slice %76 {offsets = [0, 0], sizes = [1, 128], strides = [1, 1]} : vector<2x128xf32> to vector<1x128xf32>
    %c0_27 = arith.constant 0 : index
    %c0_28 = arith.constant 0 : index
    %78 = vector.load %arg5[%c0_27, %c0_28] : memref<1x128xf32, #tpu.memory_space<vmem>>, vector<1x128xf32>
    tpu.vector_store %arg5[%c0_27, %c0_28], %77 {strides = array<i32>} : memref<1x128xf32, #tpu.memory_space<vmem>>, vector<1x128xf32>,
    %c0_29 = arith.constant 0 : index
    %c0_30 = arith.constant 0 : index
    %79 = vector.load %arg2[%c0_29, %c0_30] : memref<2x128xf32, #tpu.memory_space<vmem>>, vector<2x128xf32>
    %cst_31 = arith.constant 9.99999968E-21 : f32
    %80 = vector.broadcast %cst_31 : f32 to vector<2x128xf32>
    %81 = arith.addf %79, %80 : vector<2x128xf32>
    %82 = math.log %81 : vector<2x128xf32>
    %cst_32 = arith.constant 0.000000e+00 : f32
    %83 = vector.broadcast %cst_32 : f32 to vector<2x128xf32>
    %84 = arith.subf %83, %82 : vector<2x128xf32>
    %cst_33 = arith.constant 9.99999968E-21 : f32
    %85 = vector.broadcast %cst_33 : f32 to vector<2x128xf32>
    %86 = arith.addf %84, %85 : vector<2x128xf32>
    %87 = math.log %86 : vector<2x128xf32>
    %cst_34 = arith.constant 0.000000e+00 : f32
    %88 = vector.broadcast %cst_34 : f32 to vector<2x128xf32>
    %89 = arith.subf %88, %87 : vector<2x128xf32>
    %90 = arith.addf %66, %89 : vector<2x128xf32>
    %cst_35 = arith.constant 1.42857146 : f32
    %91 = vector.broadcast %cst_35 : f32 to vector<2x128xf32>
    %92 = arith.mulf %90, %91 : vector<2x128xf32>
    %cst_36 = arith.constant dense<0xFF800000> : vector<2xf32>
    %93 = vector.multi_reduction <maximumf>, %92, %cst_36 [1] : vector<2x128xf32> to vector<2xf32>
    %94 = vector.shape_cast %93 : vector<2xf32> to vector<2x1xf32>
    %95 = vector.broadcast %94 : vector<2x1xf32> to vector<2x128xf32>
    %96 = arith.subf %92, %95 : vector<2x128xf32>
    %97 = math.exp %96 : vector<2x128xf32>
    %cst_37 = arith.constant dense<0.000000e+00> : vector<2xf32>
    %98 = vector.multi_reduction <add>, %97, %cst_37 [1] : vector<2x128xf32> to vector<2xf32>
    %99 = vector.shape_cast %98 : vector<2xf32> to vector<2x1xf32>
    %100 = tpu.reciprocal %99 {approx = true} : vector<2x1xf32> -> vector<2x1xf32>
    %101 = vector.broadcast %100 : vector<2x1xf32> to vector<2x128xf32>
    %102 = arith.mulf %97, %101 : vector<2x128xf32>
    %cst_38 = arith.constant dense<0xFF800000> : vector<2xf32>
    %103 = vector.multi_reduction <maximumf>, %102, %cst_38 [1] : vector<2x128xf32> to vector<2xf32>
    %104 = vector.shape_cast %103 : vector<2xf32> to vector<2x1xf32>
    %105 = vector.broadcast %104 : vector<2x1xf32> to vector<2x128xf32>
    %106 = arith.cmpf oeq, %102, %105 : vector<2x128xf32>
    %cst_39 = arith.constant 1.000000e+00 : f32
    %cst_40 = arith.constant 0.000000e+00 : f32
    %107 = vector.broadcast %cst_39 : f32 to vector<2x128xf32>
    %108 = vector.broadcast %cst_40 : f32 to vector<2x128xf32>
    %109 = arith.select %106, %107, %108 : vector<2x128xi1>, vector<2x128xf32>
    %c0_41 = arith.constant 0 : index
    %c0_42 = arith.constant 0 : index
    %110 = vector.load %arg6[%c0_41, %c0_42] : memref<2x128xf32, #tpu.memory_space<vmem>>, vector<2x128xf32>
    tpu.vector_store %arg6[%c0_41, %c0_42], %109 {strides = array<i32>} : memref<2x128xf32, #tpu.memory_space<vmem>>, vector<2x128xf32>,
    return
  }
}

</mosaic_0001>

<bundles_post_ra>
// kernel: gumbel_net_forward.1
= control target key start
LH: loop header
LB: loop body
LE: loop exit
PB: predicated region body
PF: predicated region fallthrough
CT: control target
= control target key end

     0   :  { %v707_v3 = vmov 0.0|0.0   ;;  %v708_v6 = vmov 0.0   ;;  %vm105_vm0 = vcmask 64512   ;;  %vm709_vm1 = vmmov 0   ;;  %s931_s0 = inlined_call_operand.vmem [shape: f32[2,8], index: 0, kind: input, shape index: {}]   ;;  %s932_s1 = inlined_call_operand.vmem [shape: f32[2,32], index: 1, kind: input, shape index: {}]   ;;  %s933_s2 = inlined_call_operand.vmem [shape: f32[2,128], index: 2, kind: input, shape index: {}]   ;;  %s934_s3 = inlined_call_operand.vmem [shape: f32[296,128], index: 3, kind: input, shape index: {}]   ;;  %s935_s4 = inlined_call_operand.vmem [shape: f32[8,128], index: 4, kind: input, shape index: {}]   ;;  %s936_s5 = inlined_call_operand.hbm [shape: f32[1,128], index: 5, kind: output, shape index: {0}]   ;;  %s937_s6 = inlined_call_operand.vmem [shape: f32[2,128], index: 6, kind: output, shape index: {1}]  }
   0x1   :  { %v27_v0 = vld [vmem:[%s934_s3 + $0x8] sm:$0xff]  ;;  %v28_v1 = vld [vmem:[%s934_s3 + $0x10] sm:$0xff]  ;;  %v29_v2 = vld [vmem:[%s934_s3 + $0x18] sm:$0xff]  ;;  %608 = vmatprep.subr.bf16.mxu1 %v707_v3  ;;  %533 = vmatprep.subr.mxu0 %v708_v6 }
   0x2   :  { %v609_v4 = vpack.c.bf16 %v28_v1, %v27_v0  ;;  %v30_v5 = vld [vmem:[%s934_s3 + $0x20] sm:$0xff]  ;;  %535 = vmatprep.mubr.msk.f32.mxu0 %vm709_vm1, %v708_v6 }
   0x3   :  { %v25_v7 = vld [vmem:[%s934_s3] sm:$0xff] }
   0x4   :  { %v24_v8 = vld [vmem:[%s931_s0] sm:$0x3]  ;;  %534 = vmatpush3.msra.mxu0 %v25_v7 }
   0x5   :  { %12 = vsyncpa [#allocation3], 0  ;;  %610 = vmatpush3.bf16.msra.mxu1 %v609_v4  ;;  %v612_v9 = vpack.c.bf16 %v30_v5, %v29_v2  ;;  %530 = vmatprep.mubr.msk.f32.mxu1 %vm709_vm1, %v708_v6  ;;  %v26_v10 = vld [vmem:[%s932_s1] sm:$0x3]  ;;  %vm31_vm2 = vcmask 261120   ;;  %v213_v11 = vld [vmem:[%s934_s3 + $0x28] sm:$0xff]  ;;  %v202_v58 = vlaneseq }
   0x6   :  { %611 = vmatprep.subr.bf16.mxu1 %v707_v3  ;;  %536 = vmatmul.mubr.msk.f32.vlgmr.msra.gmra.mrb[0].mxu0 %vm105_vm0, %v24_v8  ;;  %v214_v12 = vld [vmem:[%s934_s3 + $0x30] sm:$0xff]  ;;  %v215_v14 = vld [vmem:[%s934_s3 + $0x38] sm:$0xff]  ;;  %v216_v15 = vld [vmem:[%s934_s3 + $0x40] sm:$0xff]  ;;  %vm179_vm3 = vcmask 1041408  }
   0x7   :  { %638 = vmatprep.subr.bf16.mxu0 %v707_v3  ;;  %605 = vmatprep.mubr.msk.f32.mxu0 %vm709_vm1, %v708_v6  ;;  %v615_v13 = vpack.c.bf16 %v214_v12, %v213_v11  ;;  %v618_v16 = vpack.c.bf16 %v216_v15, %v215_v14  ;;  %v217_v17 = vld [vmem:[%s934_s3 + $0x48] sm:$0xff]  ;;  %v218_v18 = vld [vmem:[%s934_s3 + $0x50] sm:$0xff]  ;;  %v219_v20 = vld [vmem:[%s934_s3 + $0x58] sm:$0xff]  ;;  %v833_v60 = vshrl.u32 %v202_v58, 7 }
   0x8   :  { %v621_v19 = vpack.c.bf16 %v218_v18, %v217_v17  ;;  %v220_v21 = vld [vmem:[%s934_s3 + $0x60] sm:$0xff]  ;;  %v221_v23 = vld [vmem:[%s934_s3 + $0x68] sm:$0xff]  ;;  %v222_v24 = vld [vmem:[%s934_s3 + $0x70] sm:$0xff] }
   0x9   :  { %613 = vmatpush3.bf16.msra.mxu1 %v612_v9  ;;  %v624_v22 = vpack.c.bf16 %v220_v21, %v219_v20  ;;  %v627_v25 = vpack.c.bf16 %v222_v24, %v221_v23  ;;  %v223_v26 = vld [vmem:[%s934_s3 + $0x78] sm:$0xff]  ;;  %v224_v27 = vld [vmem:[%s934_s3 + $0x80] sm:$0xff]  ;;  %v225_v29 = vld [vmem:[%s934_s3 + $0x88] sm:$0xff]  ;;  %v204_v61 = vsub.s32 0, %v833_v60  ;;  %v209_v63 = vsub.s32 1, %v833_v60 }
   0xa   :  { %614 = vmatprep.subr.bf16.mxu1 %v707_v3  ;;  %v630_v28 = vpack.c.bf16 %v224_v27, %v223_v26  ;;  %v226_v30 = vld [vmem:[%s934_s3 + $0x90] sm:$0xff]  ;;  %v227_v32 = vld [vmem:[%s934_s3 + $0x98] sm:$0xff]  ;;  %v228_v33 = vld [vmem:[%s934_s3 + $0xa0] sm:$0xff] }
   0xb   :  { %v633_v31 = vpack.c.bf16 %v226_v30, %v225_v29  ;;  %v636_v34 = vpack.c.bf16 %v228_v33, %v227_v32  ;;  %v839_v62 = vld [vmem:[%s935_s4] sm:$0xff]  ;;  %v331_v9 = vld [vmem:[%s934_s3 + $0xa8] sm:$0xff]  ;;  %v333_v12 = vld [vmem:[%s934_s3 + $0xb8] sm:$0xff] }
   0xc   :  { %531 = vmatmul.mubr.msk.f32.vlgmr.msra.gmra.mrb[0].mxu1 %vm31_vm2, %v26_v10  ;;  %v205_v0 = vrot.slane %v839_v62, %v204_v61  ;;  %v210_v4 = vrot.slane %v839_v62, %v209_v63  ;;  %v332_v10 = vld [vmem:[%s934_s3 + $0xb0] sm:$0xff]  ;;  %v335_v15 = vld [vmem:[%s934_s3 + $0xc8] sm:$0xff]  ;;  %v337_v18 = vld [vmem:[%s934_s3 + $0xd8] sm:$0xff] }
   0xd   :  { %570 = vmatprep.mubr.msk.f32.mxu1 %vm709_vm1, %v708_v6  ;;  %616 = vmatpush3.bf16.msra.mxu1 %v615_v13  ;;  %v639_v11 = vpack.c.bf16 %v332_v10, %v331_v9  ;;  %v334_v13 = vld [vmem:[%s934_s3 + $0xc0] sm:$0xff]  ;;  %v339_v21 = vld [vmem:[%s934_s3 + $0xe8] sm:$0xff]  ;;  %v341_v24 = vld [vmem:[%s934_s3 + $0xf8] sm:$0xff]  ;;  %v349_v9 = vsub.s32 4, %v833_v60 }
   0xe   :  { %617 = vmatprep.subr.bf16.mxu1 %v707_v3  ;;  %v642_v14 = vpack.c.bf16 %v334_v13, %v333_v12  ;;  %v343_v27 = vld [vmem:[%s934_s3 + $0x108] sm:$0xff]  ;;  %v345_v30 = vld [vmem:[%s934_s3 + $0x118] sm:$0xff] }
   0xf   :  { %640 = vmatpush3.bf16.msra.mxu0 %v639_v11  ;;  %v350_v11 = vrot.slane %v839_v62, %v349_v9 }
  0x10   :  { %641 = vmatprep.subr.bf16.mxu0 %v707_v3 }
  0x11   :  { %619 = vmatpush3.bf16.msra.mxu1 %v618_v16  ;;  %v336_v16 = vld [vmem:[%s934_s3 + $0xd0] sm:$0xff] }
  0x12   :  { %620 = vmatprep.subr.bf16.mxu1 %v707_v3  ;;  %v645_v17 = vpack.c.bf16 %v336_v16, %v335_v15 }
  0x13   :  { %643 = vmatpush3.bf16.msra.mxu0 %v642_v14 }
  0x14   :  { %644 = vmatprep.subr.bf16.mxu0 %v707_v3 }
  0x15   :  { %622 = vmatpush3.bf16.msra.mxu1 %v621_v19  ;;  %v338_v19 = vld [vmem:[%s934_s3 + $0xe0] sm:$0xff] }
  0x16   :  { %623 = vmatprep.subr.bf16.mxu1 %v707_v3  ;;  %v648_v20 = vpack.c.bf16 %v338_v19, %v337_v18 }
  0x17   :  { %646 = vmatpush3.bf16.msra.mxu0 %v645_v17 }
  0x18   :  { %647 = vmatprep.subr.bf16.mxu0 %v707_v3 }
  0x19   :  { %625 = vmatpush3.bf16.msra.mxu1 %v624_v22  ;;  %v340_v22 = vld [vmem:[%s934_s3 + $0xf0] sm:$0xff] }
  0x1a   :  { %626 = vmatprep.subr.bf16.mxu1 %v707_v3  ;;  %v651_v23 = vpack.c.bf16 %v340_v22, %v339_v21 }
  0x1b   :  { %649 = vmatpush3.bf16.msra.mxu0 %v648_v20 }
  0x1c   :  { %650 = vmatprep.subr.bf16.mxu0 %v707_v3 }
  0x1d   :  { %628 = vmatpush3.bf16.msra.mxu1 %v627_v25  ;;  %v342_v25 = vld [vmem:[%s934_s3 + $0x100] sm:$0xff] }
  0x1e   :  { %629 = vmatprep.subr.bf16.mxu1 %v707_v3  ;;  %v654_v26 = vpack.c.bf16 %v342_v25, %v341_v24 }
  0x1f   :  { %652 = vmatpush3.bf16.msra.mxu0 %v651_v23 }
  0x20   :  { %653 = vmatprep.subr.bf16.mxu0 %v707_v3 }
  0x21   :  { %631 = vmatpush3.bf16.msra.mxu1 %v630_v28  ;;  %v344_v28 = vld [vmem:[%s934_s3 + $0x110] sm:$0xff] }
  0x22   :  { %632 = vmatprep.subr.bf16.mxu1 %v707_v3  ;;  %v657_v29 = vpack.c.bf16 %v344_v28, %v343_v27 }
  0x23   :  { %655 = vmatpush3.bf16.msra.mxu0 %v654_v26 }
  0x24   :  { %656 = vmatprep.subr.bf16.mxu0 %v707_v3 }
  0x25   :  { %634 = vmatpush3.bf16.msra.mxu1 %v633_v31  ;;  %v346_v31 = vld [vmem:[%s934_s3 + $0x120] sm:$0xff] }
  0x26   :  { %635 = vmatprep.subr.bf16.mxu1 %v707_v3  ;;  %v660_v32 = vpack.c.bf16 %v346_v31, %v345_v30 }
  0x27   :  { %658 = vmatpush3.bf16.msra.mxu0 %v657_v29 }
  0x28   :  { %659 = vmatprep.subr.bf16.mxu0 %v707_v3 }
  0x29   :  { %637 = vmatpush3.bf16.msra.mxu1 %v636_v34 }
  0x2b   :  { %661 = vmatpush3.bf16.msra.mxu0 %v660_v32 }
  0xd9   :  { %v175_v35 = vpop.f32.mrb[0].mxu0 }
  0xda   :  { %v537_v36 = vpop.f32.mrb[1].mxu0 }
  0xdf   :  { %v101_v37 = vpop.f32.mrb[0].mxu1 }
  0xe0   :  { %v176_v38 = vadd.f32 %v175_v35, %v101_v37  ;;  %v532_v39 = vpop.f32.mrb[1].mxu1 }
  0xe2   :  { %v180_v40 = vsel %vm179_vm3, %v176_v38, 0.0 }
  0xe3   :  { %v181_v41 = vrot.slane %v180_v40, 4 }
  0xe5   :  { %v182_v42 = vadd.f32 %v181_v41, %v180_v40 }
  0xe7   :  { %v183_v43 = vrot.slane %v182_v42, 2 }
  0xe9   :  { %v184_v44 = vadd.f32 %v183_v43, %v182_v42 }
  0xeb   :  { %v185_v45 = vrot.slane %v184_v44, 1 }
  0xed   :  { %v186_v46 = vadd.f32 %v185_v45, %v184_v44 }
  0xef   :  { %v188_v47 = vmul.f32 0.5, %v186_v46 }
  0xf1   :  { %v189_v48 = vsub.f32 %v176_v38, %v188_v47 }
  0xf3   :  { %v190_v49 = vmul.f32 %v189_v48, %v189_v48 }
  0xf5   :  { %v191_v50 = vsel %vm179_vm3, %v190_v49, 0.0 }
  0xf6   :  { %v192_v51 = vrot.slane %v191_v50, 4 }
  0xf8   :  { %v193_v52 = vadd.f32 %v192_v51, %v191_v50 }
  0xfa   :  { %v194_v53 = vrot.slane %v193_v52, 2 }
  0xfc   :  { %v195_v54 = vadd.f32 %v194_v53, %v193_v52  ;;  %v322_v53 = vsub.s32 2, %v833_v60 }
  0xfe   :  { %v196_v55 = vrot.slane %v195_v54, 1 }
 0x100   :  { %v197_v56 = vadd.f32 %v196_v55, %v195_v54  ;;  %v327_v54 = vsub.s32 3, %v833_v60  ;;  %v323_v55 = vrot.slane %v839_v62, %v322_v53 }
 0x102   :  { %v198_v57 = vmul.f32 0.5, %v197_v56  ;;  %v328_v58 = vrot.slane %v839_v62, %v327_v54 }
 0x104   :  { %v199_v59 = vadd.f32 1e-05, %v198_v57 }
 0x106   :  { %667 = vrsqrt.f32 %v199_v59 }
 0x110   :  { %v668_v1 = vpop.eup %667 }
 0x111   :  { %v201_v2 = vmul.f32 %v668_v1, %v189_v48 }
 0x113   :  { %v206_v5 = vmul.f32 %v205_v0, %v201_v2  ;;  %v433_v0 = vld [vmem:[%s933_s2] sm:$0x3]  ;;  %s710_s2 = smov [#allocation2]  }
 0x114   :  { %v434_v1 = vadd.f32 1e-20, %v433_v0  ;;  %s467_s22 = sshll.u32 %s710_s2, 4  ;;  %s468_s22 = int_to_ptr.vmem [resolvable:$true] %s467_s22 }
 0x115   :  { %v211_v7 = vadd.f32 %v210_v4, %v206_v5  ;;  %s683_s23 = scalar_lea.vmem %s468_s22, 16  ;;  %s687_s24 = scalar_lea.vmem %s468_s22, 32 }
 0x116   :  { %p684_p0 = scmp.ne.s32.totalorder %s468_s22, %s683_s23  ;;  %p688_p1 = scmp.lt.s32.totalorder %s468_s22, %s468_s22 }
 0x117   :  { %v212_v8 = vmax.f32 %v211_v7, 0.0  ;;  %p689_p2 = scmp.lt.s32.totalorder %s687_s24, %s683_s23 }
 0x119   :  { %571 = vmatmul.mubr.f32.vlgmr.msra.gmra.mrb[2].mxu1 %v212_v8  ;;  %p690_p3 = por %p689_p2, %p688_p1 }
 0x11b   :  { %p691_p4 = pnand %p690_p3, %p684_p0 }
 0x1ec   :  { %v295_v33 = vpop.f32.mrb[2].mxu1 }
 0x1ed   :  { %v299_v34 = vsel %vm179_vm3, %v295_v33, 0.0  ;;  %v572_v35 = vpop.f32.mrb[3].mxu1 }
 0x1ee   :  { %v300_v36 = vrot.slane %v299_v34, 4 }
 0x1f0   :  { %v301_v37 = vadd.f32 %v300_v36, %v299_v34 }
 0x1f2   :  { %v302_v38 = vrot.slane %v301_v37, 2 }
 0x1f4   :  { %v303_v39 = vadd.f32 %v302_v38, %v301_v37 }
 0x1f6   :  { %v304_v40 = vrot.slane %v303_v39, 1 }
 0x1f8   :  { %v305_v3 = vadd.f32 %v304_v40, %v303_v39 }
 0x1fa   :  { %v306_v41 = vmul.f32 0.5, %v305_v3 }
 0x1fc   :  { %v307_v42 = vsub.f32 %v295_v33, %v306_v41 }
 0x1fe   :  { %v308_v43 = vmul.f32 %v307_v42, %v307_v42 }
 0x200   :  { %v309_v44 = vsel %vm179_vm3, %v308_v43, 0.0 }
 0x201   :  { %v310_v45 = vrot.slane %v309_v44, 4 }
 0x203   :  { %v311_v46 = vadd.f32 %v310_v45, %v309_v44 }
 0x205   :  { %v312_v47 = vrot.slane %v311_v46, 2 }
 0x207   :  { %v313_v48 = vadd.f32 %v312_v47, %v311_v46 }
 0x209   :  { %v314_v49 = vrot.slane %v313_v48, 1 }
 0x20b   :  { %v315_v50 = vadd.f32 %v314_v49, %v313_v48 }
 0x20d   :  { %v316_v51 = vmul.f32 0.5, %v315_v50 }
 0x20f   :  { %v317_v52 = vadd.f32 1e-05, %v316_v51 }
 0x211   :  { %669 = vrsqrt.f32 %v317_v52 }
 0x212   :  { %671 = vlog2.f32 %v434_v1 }
 0x21b   :  { %v670_v56 = vpop.eup %669 }
 0x21c   :  { %v319_v57 = vmul.f32 %v670_v56, %v307_v42  ;;  %v672_v2 = vpop.eup %671 }
 0x21d   :  { %v436_v4 = vmul.f32 0.6931472, %v672_v2 }
 0x21e   :  { %v324_v59 = vmul.f32 %v323_v55, %v319_v57 }
 0x21f   :  { %v437_v5 = vsub.f32 0.0, %v436_v4 }
 0x220   :  { %v329_v61 = vadd.f32 %v328_v58, %v324_v59 }
 0x221   :  { %v438_v7 = vadd.f32 1e-20, %v437_v5 }
 0x222   :  { %v330_v63 = vmax.f32 %v329_v61, 0.0 }
 0x223   :  { %673 = vlog2.f32 %v438_v7 }
 0x224   :  { %606 = vmatmul.mubr.f32.vlgmr.msra.gmra.mrb[2].mxu0 %v330_v63 }
 0x22d   :  { %v674_v8 = vpop.eup %673 }
 0x22e   :  { %v440_v10 = vmul.f32 0.6931472, %v674_v8 }
 0x230   :  { %v441_v12 = vsub.f32 0.0, %v440_v10 }
 0x2f7   :  { %v417_v13 = vpop.f32.mrb[2].mxu0 }
 0x2f8   :  { %v418_v14 = vadd.f32 %v417_v13, %v350_v11  ;;  %v607_v15 = vpop.f32.mrb[3].mxu0 }
 0x2fa   :  { %v442_v16 = vadd.f32 %v441_v12, %v418_v14  ;;  %v421_v19 = vsel %vm179_vm3, %v418_v14, -inf }
 0x2fc   :  { %v443_v17 = vmul.f32 1.4285715, %v442_v16 }
 0x2fe   :  { %v444_v18 = vsel %vm179_vm3, %v443_v17, -inf }
 0x2ff   :  { %445 = vmax.xlane.f32.xlu0 %v444_v18 }
 0x303   :  { %422 = vmax.xlane.f32.xlu0 %v421_v19 }
 0x38c   :  { %v446_v20 = vpop.xlane.xlu0 %445 }
 0x38d   :  { %v447_v21 = vsub.f32 %v443_v17, %v446_v20 }
 0x38f   :  { %v448_v22 = vmul.f32 1.442695, %v447_v21 }
 0x390   :  { %v423_v23 = vpop.xlane.xlu0 %422 }
 0x391   :  { %675 = vpow2.f32 %v448_v22  ;;  %v424_v60 = vsub.f32 %v418_v14, %v423_v23 }
 0x393   :  { %v425_v24 = vmul.f32 1.442695, %v424_v60 }
 0x395   :  { %677 = vpow2.f32 %v425_v24 }
 0x39b   :  { %v676_v62 = vpop.eup %675 }
 0x39c   :  { %v450_v25 = vsel %vm179_vm3, %v676_v62, 0.0 }
 0x39d   :  { %451 = vadd.xlane.f32.xlu1 %v450_v25 }
 0x39f   :  { %v678_v26 = vpop.eup %677 }
 0x3a0   :  { %v427_v27 = vsel %vm179_vm3, %v678_v26, 0.0 }
 0x3a1   :  { %428 = vadd.xlane.f32.xlu1 %v427_v27 }
 0x42a   :  { %v452_v28 = vpop.xlane.xlu1 %451 }
 0x42b   :  { %679 = vrcp.f32 %v452_v28 }
 0x42e   :  { %v429_v29 = vpop.xlane.xlu1 %428 }
 0x42f   :  { %681 = vrcp.f32 %v429_v29 }
 0x435   :  { %v680_v30 = vpop.eup %679 }
 0x436   :  { %v454_v31 = vmul.f32 %v680_v30, %v676_v62 }
 0x438   :  { %v455_v32 = vsel %vm179_vm3, %v454_v31, -inf }
 0x439   :  { %v682_v33 = vpop.eup %681  ;;  %456 = vmax.xlane.f32.xlu0 %v455_v32 }
 0x43a   :  { %v431_v34 = vmul.f32 %v682_v33, %v678_v26 }
 0x43c   :  { %432 = vst [vmem:[#allocation2] sm:$0x1] %v431_v34 }
 0x43d   :  { %694 = shalt.err (!%p691_p4)
}
 0x43e   :  { %s695_s27 = scalar_lea.hbm %s936_s5, 16 }
 0x43f   :  { %p696_p5 = scmp.ne.s32.totalorder %s936_s5, %s695_s27  ;;  %p699_p6 = scmp.lt.u32.totalorder %s695_s27, %s936_s5 }
 0x441   :  { %p701_p7 = pnand %p699_p6, %p696_p5 }
 0x443   :  { %704 = shalt.err (!%p701_p7)
}
 0x444   :  { %470 = dma.vmem_to_hbm [thread:$0]  %s468_s22, 16, %s936_s5, [#allocation3]  }
 0x4c6   :  { %v457_v35 = vpop.xlane.xlu0 %456 }
 0x4c7   :  { %vm458_vm4 = vcmp.eq.f32.partialorder %v454_v31, %v457_v35 }
 0x4c8   :  { %v459_v36 = vsel %vm458_vm4, 1.0, %v708_v6 }
 0x4c9   :  { %460 = vst [vmem:[%s937_s6] sm:$0x3] %v459_v36 }
 0x4ca   :  { %705 = dma.done.wait [#allocation3], 16  }
 0x4cb   :  { %706 = vsyncadd [#allocation3], 4294967280 }
 0x4cc   :  { %478 = vsyncpa [#allocation3], 1 }

</bundles_post_ra>
